<compile_context>
chip_gen: v5e
topology: v5e:2x2
jax: 0.10.0
libtpu: 0.0.40
codegen_flags: <defaults>
</compile_context>

<pallas_src>
import functools
import math

import jax
import jax.numpy as jnp
from jax import lax
from jax.experimental import pallas as pl
from jax.experimental.pallas import tpu as pltpu


def _round_up(n, m):
    return ((n + m - 1) // m) * m


def _vmem_capacity_bytes():
    """Physical per-core VMEM (128 MiB v5e/v6e, 64 MiB v7x); conservative fallback."""
    try:
        cap = getattr(pltpu.get_tpu_info(), "vmem_capacity_bytes", None)
        if cap:
            return int(cap)
    except Exception:
        pass
    return 64 * 1024 * 1024


def _adapter_kernel(x_ref, wd_ref, wu_ref, o_ref, *, slab, n_slabs):
    # x_ref:  (tm, D)      activation row tile (native dtype)
    # wd_ref: (D, r_pad)   down-proj weight, pre-transposed + rank-padded  (K, N)
    # wu_ref: (r_pad, D)   up-proj weight,   pre-transposed + rank-padded  (K, N)
    # o_ref:  (tm, D)      output tile
    x = x_ref[...]  # native dtype straight into the MXU

    # h = relu(x @ Wd): canonical (M,K)x(K,N) — no in-kernel weight transpose.
    h = jnp.dot(x, wd_ref[...], preferred_element_type=jnp.float32)
    h = jnp.maximum(h, 0.0).astype(x.dtype)  # back to operand dtype for 2nd MXU pass

    # Up-projection in lane-aligned column slabs so the full tm x D f32 result
    # never has to be live at once (cuts vreg/VMEM pressure for large D / v7x).
    for j in range(n_slabs):
        lo = j * slab
        out = jnp.dot(h, wu_ref[:, lo:lo + slab], preferred_element_type=jnp.float32)
        o_ref[:, lo:lo + slab] = out.astype(o_ref.dtype)


def adapter_forward(x, w_down, w_up, *, lane=128, max_tm=512):
    """Adapter forward: up(relu(down(x))).

    x:      (..., dim)
    w_down: (bottleneck_dim, dim)  -- nn.Linear(dim, bottleneck, bias=False).weight
    w_up:   (dim, bottleneck_dim)  -- nn.Linear(bottleneck, dim, bias=False).weight
    """
    *lead, D = x.shape
    r = w_down.shape[0]
    M = math.prod(lead) if lead else 1
    x2 = x.reshape(M, D)

    # Keep the MXU path uniform: weights in the activation dtype.
    w_down = w_down.astype(x.dtype)
    w_up = w_up.astype(x.dtype)

    # One-time prep (tiny, r x D each): transpose to canonical (K, N) layouts and
    # zero-pad the bottleneck to a lane-dense multiple of 128.  Zeros survive relu
    # as zeros and contribute nothing to the up-projection, so results are unchanged.
    r_pad = _round_up(max(r, 1), lane)
    wd_t = w_down.T  # (D, r)
    wu_t = w_up.T    # (r, D)
    if r_pad != r:
        wd_t = jnp.pad(wd_t, ((0, 0), (0, r_pad - r)))
        wu_t = jnp.pad(wu_t, ((0, r_pad - r), (0, 0)))

    itemsize = x2.dtype.itemsize
    w_itemsize = wd_t.dtype.itemsize
    # Row-tile quantum = sublane packing of the dtype (8 f32 / 16 bf16 / 32 int8).
    quantum = max(8, 32 // max(itemsize, 1))

    # Up-projection column slab (lane-aligned) for large D.
    slab = 512 if (D >= 2048 and D % 512 == 0) else D
    n_slabs = D // slab

    def footprint(tm, w_bufs):
        x_io = 2 * tm * D * itemsize                 # double-buffered input tile
        o_io = 2 * tm * D * itemsize                 # double-buffered output tile
        w = w_bufs * 2 * D * r_pad * w_itemsize      # both weights
        tmp = tm * r_pad * 4 + tm * r_pad * itemsize + tm * slab * 4  # f32 hidden + cast + f32 slab
        return x_io + o_io + w + tmp

    vmem_cap = _vmem_capacity_bytes()
    budget = int(vmem_cap * 0.7)

    # Largest power-of-two row tile (multiple of quantum) that fits the budget.
    tm = quantum
    cand = max_tm
    while cand >= quantum:
        if footprint(cand, 2) <= budget:
            tm = cand
            break
        cand //= 2

    # Shrink for small M; keep tiles quantum-aligned.
    tm_eff = min(tm, _round_up(M, quantum))
    # v7x has 2 TensorCores: make sure the parallel row axis has >= 2 steps.
    if pl.cdiv(M, tm_eff) < 2 and M >= 2 * quantum:
        tm_eff = _round_up(pl.cdiv(M, 2), quantum)
    grid = pl.cdiv(M, tm_eff)

    vmem_limit = int(min(max(footprint(tm_eff, 2) * 1.25 + (1 << 20), 32 << 20),
                         int(vmem_cap * 0.9)))

    cost = pl.CostEstimate(
        flops=4 * M * D * r_pad,  # two (M, D, r_pad) matmuls
        transcendentals=0,
        bytes_accessed=(x2.size * itemsize + wd_t.size * w_itemsize
                        + wu_t.size * w_itemsize + M * D * itemsize),
    )

    kernel = functools.partial(_adapter_kernel, slab=slab, n_slabs=n_slabs)

    def build(single_buffer_weights):
        if single_buffer_weights:
            # Weight blocks never change across the grid -> single-buffer them.
            w_specs = [
                pl.BlockSpec((D, r_pad), lambda i: (0, 0),
                             pipeline_mode=pl.Buffered(buffer_count=1)),
                pl.BlockSpec((r_pad, D), lambda i: (0, 0),
                             pipeline_mode=pl.Buffered(buffer_count=1)),
            ]
        else:
            w_specs = [
                pl.BlockSpec((D, r_pad), lambda i: (0, 0)),
                pl.BlockSpec((r_pad, D), lambda i: (0, 0)),
            ]
        return pl.pallas_call(
            kernel,
            out_shape=jax.ShapeDtypeStruct((M, D), x.dtype),
            grid_spec=pltpu.PrefetchScalarGridSpec(
                num_scalar_prefetch=0,
                grid=(grid,),
                in_specs=[pl.BlockSpec((tm_eff, D), lambda i: (i, 0))] + w_specs,
                out_specs=pl.BlockSpec((tm_eff, D), lambda i: (i, 0)),
            ),
            compiler_params=pltpu.CompilerParams(
                dimension_semantics=("parallel",),
                vmem_limit_bytes=vmem_limit,
            ),
            cost_estimate=cost,
        )

    try:
        out2 = build(True)(x2, wd_t, wu_t)
    except Exception:
        # pipeline_mode / Buffered(1) unsupported on this jax build: fall back to
        # default double-buffered weight blocks (identical results).
        out2 = build(False)(x2, wd_t, wu_t)

    return out2.reshape(*lead, D)


def adapter_ref(x, w_down, w_up):
    h = jnp.maximum(
        jnp.einsum("...d,rd->...r", x, w_down, precision=lax.Precision.HIGHEST), 0.0)
    return jnp.einsum("...r,dr->...d", h, w_up, precision=lax.Precision.HIGHEST)


if __name__ == "__main__":
    # Small shapes consistent with the module: 3-D transformer-like activation.
    batch, seq, dim, bottleneck = 2, 8, 32, 8

    key = jax.random.PRNGKey(0)
    kx, kd, ku = jax.random.split(key, 3)

    x = jax.random.normal(kx, (batch, seq, dim), dtype=jnp.float32)
    # Deterministic synthetic parameters (native PyTorch weight layouts).
    w_down = jax.random.normal(kd, (bottleneck, dim), dtype=jnp.float32) * 0.05
    w_up = jax.random.normal(ku, (dim, bottleneck), dtype=jnp.float32) * 0.05

    out = jax.block_until_ready(adapter_forward(x, w_down, w_up))
    ref = adapter_ref(x, w_down, w_up)

    assert out.shape == (batch, seq, dim)
    # MXU f32 accumulation with an intermediate cast of the hidden activation:
    # agrees with the all-f32 reference to ~1e-3.
    assert jnp.allclose(out, ref, atol=1e-3, rtol=1e-3), "mismatch vs reference"

    print("KERNEL_OK")
</pallas_src>

<mosaic_0001>
module attributes {stable_mosaic.version = 11 : i64} {
  func.func @_adapter_kernel(%arg0: i32, %arg1: memref<8x32xf32, #tpu.memory_space<vmem>>, %arg2: memref<32x128xf32, #tpu.memory_space<vmem>>, %arg3: memref<128x32xf32, #tpu.memory_space<vmem>>, %arg4: memref<8x32xf32, #tpu.memory_space<vmem>>) attributes {dimension_semantics = [#tpu.dimension_semantics<parallel>], iteration_bounds = array<i64: 2>, scalar_prefetch = 0 : i64, scratch_operands = 0 : i64, tpu.core_type = #tpu.core_type<tc>, window_params = [{transform_indices = @transform_0, window_bounds = array<i64: 8, 32>}, {pipeline_mode = #tpu.pipeline_mode<synchronous>, transform_indices = @transform_1, window_bounds = array<i64: 32, 128>}, {pipeline_mode = #tpu.pipeline_mode<synchronous>, transform_indices = @transform_2, window_bounds = array<i64: 128, 32>}, {transform_indices = @transform_3, window_bounds = array<i64: 8, 32>}]} {
    %c0 = arith.constant 0 : index
    %c0_0 = arith.constant 0 : index
    %0 = vector.load %arg1[%c0, %c0_0] : memref<8x32xf32, #tpu.memory_space<vmem>>, vector<8x32xf32>
    %c0_1 = arith.constant 0 : index
    %c0_2 = arith.constant 0 : index
    %1 = vector.load %arg2[%c0_1, %c0_2] : memref<32x128xf32, #tpu.memory_space<vmem>>, vector<32x128xf32>
    %cst = arith.constant dense<0.000000e+00> : vector<8x128xf32>
    %2 = tpu.matmul %0, %1, %cst {dimension_numbers = #tpu.dot_dimension_numbers<[1], [0], [0], [1], [0, 0, 1, 1], [], []>} : vector<8x32xf32>, vector<32x128xf32>, vector<8x128xf32> -> vector<8x128xf32>
    %cst_3 = arith.constant 0.000000e+00 : f32
    %3 = vector.broadcast %cst_3 : f32 to vector<8x128xf32>
    %4 = arith.maximumf %2, %3 : vector<8x128xf32>
    %c0_4 = arith.constant 0 : index
    %c0_5 = arith.constant 0 : index
    %5 = vector.load %arg3[%c0_4, %c0_5] : memref<128x32xf32, #tpu.memory_space<vmem>>, vector<128x32xf32>
    %cst_6 = arith.constant dense<0.000000e+00> : vector<8x32xf32>
    %6 = tpu.matmul %4, %5, %cst_6 {dimension_numbers = #tpu.dot_dimension_numbers<[1], [0], [0], [1], [0, 0, 1, 1], [], []>} : vector<8x128xf32>, vector<128x32xf32>, vector<8x32xf32> -> vector<8x32xf32>
    %c0_7 = arith.constant 0 : index
    %c0_8 = arith.constant 0 : index
    %7 = vector.load %arg4[%c0_7, %c0_8] : memref<8x32xf32, #tpu.memory_space<vmem>>, vector<8x32xf32>
    tpu.vector_store %arg4[%c0_7, %c0_8], %6 {strides = array<i32>} : memref<8x32xf32, #tpu.memory_space<vmem>>, vector<8x32xf32>,
    return
  }
  func.func @transform_0(%arg0: i32) -> (i32, i32) {
    %c0_i32 = arith.constant 0 : i32
    %c0_i32_0 = arith.constant 0 : i32
    return %arg0, %c0_i32 : i32, i32
  }
  func.func @transform_1(%arg0: i32) -> (i32, i32) {
    %c0_i32 = arith.constant 0 : i32
    %c0_i32_0 = arith.constant 0 : i32
    %c0_i32_1 = arith.constant 0 : i32
    return %c0_i32, %c0_i32_0 : i32, i32
  }
  func.func @transform_2(%arg0: i32) -> (i32, i32) {
    %c0_i32 = arith.constant 0 : i32
    %c0_i32_0 = arith.constant 0 : i32
    %c0_i32_1 = arith.constant 0 : i32
    return %c0_i32, %c0_i32_0 : i32, i32
  }
  func.func @transform_3(%arg0: i32) -> (i32, i32) {
    %c0_i32 = arith.constant 0 : i32
    %c0_i32_0 = arith.constant 0 : i32
    return %arg0, %c0_i32 : i32, i32
  }
}

module attributes {stable_mosaic.version = 11 : i64} {
  func.func @_adapter_kernel(%arg0: i32, %arg1: memref<8x32xf32, #tpu.memory_space<vmem>>, %arg2: memref<32x128xf32, #tpu.memory_space<vmem>>, %arg3: memref<128x32xf32, #tpu.memory_space<vmem>>, %arg4: memref<8x32xf32, #tpu.memory_space<vmem>>) attributes {dimension_semantics = [#tpu.dimension_semantics<parallel>], iteration_bounds = array<i64: 2>, scalar_prefetch = 0 : i64, scratch_operands = 0 : i64, tpu.core_type = #tpu.core_type<tc>, window_params = [{transform_indices = @transform_0, window_bounds = array<i64: 8, 32>}, {pipeline_mode = #tpu.pipeline_mode<synchronous>, transform_indices = @transform_1, window_bounds = array<i64: 32, 128>}, {pipeline_mode = #tpu.pipeline_mode<synchronous>, transform_indices = @transform_2, window_bounds = array<i64: 128, 32>}, {transform_indices = @transform_3, window_bounds = array<i64: 8, 32>}]} {
    %c0 = arith.constant 0 : index
    %c0_0 = arith.constant 0 : index
    %0 = vector.load %arg1[%c0, %c0_0] : memref<8x32xf32, #tpu.memory_space<vmem>>, vector<8x32xf32>
    %c0_1 = arith.constant 0 : index
    %c0_2 = arith.constant 0 : index
    %1 = vector.load %arg2[%c0_1, %c0_2] : memref<32x128xf32, #tpu.memory_space<vmem>>, vector<32x128xf32>
    %cst = arith.constant dense<0.000000e+00> : vector<8x128xf32>
    %2 = tpu.matmul %0, %1, %cst {dimension_numbers = #tpu.dot_dimension_numbers<[1], [0], [0], [1], [0, 0, 1, 1], [], []>} : vector<8x32xf32>, vector<32x128xf32>, vector<8x128xf32> -> vector<8x128xf32>
    %cst_3 = arith.constant 0.000000e+00 : f32
    %3 = vector.broadcast %cst_3 : f32 to vector<8x128xf32>
    %4 = arith.maximumf %2, %3 : vector<8x128xf32>
    %c0_4 = arith.constant 0 : index
    %c0_5 = arith.constant 0 : index
    %5 = vector.load %arg3[%c0_4, %c0_5] : memref<128x32xf32, #tpu.memory_space<vmem>>, vector<128x32xf32>
    %cst_6 = arith.constant dense<0.000000e+00> : vector<8x32xf32>
    %6 = tpu.matmul %4, %5, %cst_6 {dimension_numbers = #tpu.dot_dimension_numbers<[1], [0], [0], [1], [0, 0, 1, 1], [], []>} : vector<8x128xf32>, vector<128x32xf32>, vector<8x32xf32> -> vector<8x32xf32>
    %c0_7 = arith.constant 0 : index
    %c0_8 = arith.constant 0 : index
    %7 = vector.load %arg4[%c0_7, %c0_8] : memref<8x32xf32, #tpu.memory_space<vmem>>, vector<8x32xf32>
    tpu.vector_store %arg4[%c0_7, %c0_8], %6 {strides = array<i32>} : memref<8x32xf32, #tpu.memory_space<vmem>>, vector<8x32xf32>,
    return
  }
  func.func @transform_0(%arg0: i32) -> (i32, i32) {
    %c0_i32 = arith.constant 0 : i32
    %c0_i32_0 = arith.constant 0 : i32
    return %arg0, %c0_i32 : i32, i32
  }
  func.func @transform_1(%arg0: i32) -> (i32, i32) {
    %c0_i32 = arith.constant 0 : i32
    %c0_i32_0 = arith.constant 0 : i32
    %c0_i32_1 = arith.constant 0 : i32
    return %c0_i32, %c0_i32_0 : i32, i32
  }
  func.func @transform_2(%arg0: i32) -> (i32, i32) {
    %c0_i32 = arith.constant 0 : i32
    %c0_i32_0 = arith.constant 0 : i32
    %c0_i32_1 = arith.constant 0 : i32
    return %c0_i32, %c0_i32_0 : i32, i32
  }
  func.func @transform_3(%arg0: i32) -> (i32, i32) {
    %c0_i32 = arith.constant 0 : i32
    %c0_i32_0 = arith.constant 0 : i32
    return %arg0, %c0_i32 : i32, i32
  }
}

</mosaic_0001>

<bundles_post_ra>
// kernel: tpu_custom_call.1
= control target key start
LH: loop header
LB: loop body
LE: loop exit
PB: predicated region body
PF: predicated region fallthrough
CT: control target
= control target key end

     0   :  { %8 = vsyncpa [#allocation3], 0  ;;  %s589_s0 = inlined_call_operand.vmem [shape: f32[16,32], index: 0, kind: input, shape index: {}]   ;;  %s590_s1 = inlined_call_operand.vmem [shape: f32[32,128], index: 1, kind: input, shape index: {}]   ;;  %s591_s2 = inlined_call_operand.vmem [shape: f32[128,32], index: 2, kind: input, shape index: {}]   ;;  %s592_s3 = inlined_call_operand.hbm [shape: f32[16,32], index: 3, kind: output, shape index: {}]  }
   0x1   :  { %10 = vsyncpa [#allocation3 + $0x1], 0  ;;  %s442_s12 = smov 0   ;;  %s444_s13 = smov 0  }
   0x2   :  { %s446_s14 = smov 0   ;;  %s448_s15 = smov 0  }
   0x3 LB: > { %s463_s16 = sadd.s32 4294967295, %s420_s15   ;;  %s308_s17 = sadd.s32 4294967294, %s420_s15   ;;  %s420_s15 = sphi %s448_s15, %s598_s15   ;;  %s416_s14 = sphi %s446_s14, %s597_s14   ;;  %s412_s13 = sphi %s444_s13, %s596_s13   ;;  %s408_s12 = sphi %s442_s12, %s595_s12  }
   0x4   : > { %s467_s18 = sadd.s32 1, %s420_s15   ;;  %s91_s19 = sadd.s32 1, %s416_s14 }
   0x5   : > { %s88_s20 = ssub.s32 %s420_s15, %s467_s18  ;;  %p101_p0 = scmp.ne.s32.totalorder %s416_s14, %s412_s13 }
   0x6   : > { %p89_p1 = scmp.eq.s32.totalorder %s88_s20, 0  ;;  %p102_p2 = scmp.eq.s32.totalorder %s463_s16, 1 }
   0x7   : > { %p107_p3 = scmp.ne.s32.totalorder %s412_s13, %s408_s12  ;;  %p108_p4 = scmp.eq.s32.totalorder %s308_s17, 1 }
   0x8   : > { %s478_s21 = scalar_select %p89_p1, %s416_s14, %s91_s19  }
   0x9   : > { %p480_p5 = por %p102_p2, %p101_p0  ;;  %p484_p6 = por %p108_p4, %p107_p3 }
   0xa   : > { %p311_p7 = scmp.ge.s32.totalorder %s420_s15, 1  ;;  %p139_p8 = scmp.lt.s32.totalorder %s420_s15, 3 }
   0xc   : > { %p140_p9 = pnand %p311_p7, %p139_p8 }
   0xd   : > { %p162_p10 = scmp.lt.s32.totalorder (!%p140_p9), %s463_s16, 1  ;;  %s159_s6 = sand.u32 (!%p140_p9), 1, %s412_s13  }
   0xe   : > { %143 = sbr.rel (%p140_p9) target bundleno = 284 (0x11c), region = 32  ;;  %s316_s8 = sshll.u32 (!%p140_p9), %s463_s16, 3 }
   0xf   : > { %s244_s11 = scalar_lea.hbm (!%p140_p9), %s592_s3, %s316_s8  ;;  %s378_s28 = scalar_lea.hbm (!%p140_p9), %s592_s3, 16 }
  0x10   : > { %s248_s20 = sshll.u32 (!%p140_p9), %s244_s11, 4  ;;  %s249_s20 = int_to_ptr.hbm [resolvable:$true] %s248_s20 }
  0x11   : > { %s372_s25 = sshra.s32 (!%p140_p9), %s249_s20, 4  ;;  %s373_s25 = int_to_ptr.hbm [resolvable:$true] %s372_s25 }
  0x12   : > { %s374_s26 = scalar_lea.hbm (!%p140_p9), %s373_s25, 8  ;;  %p379_p0 = scmp.lt.s32.totalorder (!%p140_p9), %s373_s25, %s592_s3 }
  0x13   : > { %v170_v0 = vld [vmem:[%s590_s1 + $0x18] sm:$0xff]  ;;  %v169_v1 = vld [vmem:[%s590_s1 + $0x10] sm:$0xff]  ;;  %v168_v4 = vld [vmem:[%s590_s1 + $0x8] sm:$0xff]  ;;  %s163_s7 = scalar_select %p162_p10, %s463_s16, 1  ;;  %vm171_vm0 = vcmask 261120  }
  0x14   : > { %187 = vmatpush.msra.mxu0 %v170_v0  ;;  %v211_v2 = vld [vmem:[%s591_s2 + $0x78] sm:$0xff]  ;;  %v210_v3 = vld [vmem:[%s591_s2 + $0x70] sm:$0xff]  ;;  %v209_v5 = vld [vmem:[%s591_s2 + $0x68] sm:$0xff]  ;;  %p375_p11 = scmp.ne.s32.totalorder %s373_s25, %s374_s26  ;;  %p380_p1 = scmp.lt.s32.totalorder %s378_s28, %s374_s26 }
  0x15   : > { %212 = vmatpush.msra.mxu1 %v211_v2  ;;  %v167_v6 = vld [vmem:[%s590_s1] sm:$0xff]  ;;  %s313_s17 = sshll.u32 %s163_s7, 3  ;;  %v207_v9 = vld [vmem:[%s591_s2 + $0x58] sm:$0xff]  ;;  %v206_v10 = vld [vmem:[%s591_s2 + $0x50] sm:$0xff]  ;;  %s312_s7 = sshll.u32 %s159_s6, 3 }
  0x16   : > { %188 = vmatpush.msra.mxu0 %v169_v1  ;;  %s165_s24 = scalar_lea.vmem %s589_s0, %s313_s17  ;;  %v208_v7 = vld [vmem:[%s591_s2 + $0x60] sm:$0xff]  ;;  %v205_v11 = vld [vmem:[%s591_s2 + $0x48] sm:$0xff]  ;;  %v203_v13 = vld [vmem:[%s591_s2 + $0x38] sm:$0xff]  ;;  %s161_s17 = scalar_lea.vmem [#allocation2], %s312_s7 }
  0x17   : > { %213 = vmatpush.msra.mxu1 %v210_v3  ;;  %v166_v8 = vld [vmem:[%s165_s24] sm:$0xff]  ;;  %v202_v14 = vld [vmem:[%s591_s2 + $0x30] sm:$0xff]  ;;  %v201_v15 = vld [vmem:[%s591_s2 + $0x28] sm:$0xff]  ;;  %s246_s19 = sshll.u32 %s161_s17, 4  ;;  %s234_s24 = scalar_lea.sflag [#allocation3], %s159_s6  ;;  %s247_s19 = int_to_ptr.vmem [resolvable:$true] %s246_s19 }
  0x18   : > { %189 = vmatpush.msra.mxu0 %v168_v4  ;;  %v204_v12 = vld [vmem:[%s591_s2 + $0x40] sm:$0xff]  ;;  %v199_v17 = vld [vmem:[%s591_s2 + $0x18] sm:$0xff]  ;;  %v198_v18 = vld [vmem:[%s591_s2 + $0x10] sm:$0xff]  ;;  %p376_p12 = pnand %p375_p11, %p480_p5  ;;  %p381_p2 = por %p380_p1, %p379_p0 }
  0x19   : > { %214 = vmatpush.msra.mxu1 %v209_v5  ;;  %v200_v16 = vld [vmem:[%s591_s2 + $0x20] sm:$0xff]  ;;  %v197_v19 = vld [vmem:[%s591_s2 + $0x8] sm:$0xff] }
  0x1a   : > { %190 = vmatpush.msra.mxu0 %v167_v6  ;;  %v196_v20 = vld [vmem:[%s591_s2] sm:$0xff]  ;;  %p377_p13 = pneg %p376_p12 }
  0x1b   : > { %314 = vmatmul.msk.f32.vlgmr.msra.gmra.mxu0 %vm171_vm0, %v166_v8  ;;  %215 = vmatpush.msra.mxu1 %v208_v7 }
  0x1c   : > { %p382_p3 = pnand %p381_p2, %p377_p13 }
  0x1d   : > { %216 = vmatpush.msra.mxu1 %v207_v9 }
  0x1f   : > { %217 = vmatpush.msra.mxu1 %v206_v10 }
  0x21   : > { %218 = vmatpush.msra.mxu1 %v205_v11 }
  0x23   : > { %219 = vmatpush.msra.mxu1 %v204_v12 }
  0x25   : > { %220 = vmatpush.msra.mxu1 %v203_v13 }
  0x27   : > { %221 = vmatpush.msra.mxu1 %v202_v14 }
  0x29   : > { %222 = vmatpush.msra.mxu1 %v201_v15 }
  0x2b   : > { %223 = vmatpush.msra.mxu1 %v200_v16 }
  0x2d   : > { %224 = vmatpush.msra.mxu1 %v199_v17 }
  0x2f   : > { %225 = vmatpush.msra.mxu1 %v198_v18 }
  0x31   : > { %226 = vmatpush.msra.mxu1 %v197_v19 }
  0x33   : > { %227 = vmatpush.msra.mxu1 %v196_v20 }
  0x98   : > { %v192_v21 = vpop.f32.mrf.mxu0 }
  0x99   : > { %v195_v22 = vmax.f32 %v192_v21, 0.0 }
  0x9b   : > { %228 = vmatmul.f32.vlgmr.msra.gmra.mxu1 %v195_v22 }
 0x118   : > { %v229_v23 = vpop.f32.mrf.mxu1 }
 0x119   : > { %232 = vst.msk [vmem:[%s161_s17] sm:$0xff] %vm171_vm0, %v229_v23 }
 0x11a   : > { %385 = shalt.err (!%p382_p3)
}
 0x11b   : > { %319 = dma.vmem_to_hbm [thread:$0]  (%p480_p5), %s247_s19, 128, %s249_s20, %s234_s24  }
 0x11c PF: > { %p325_p4 = scmp.ge.s32.totalorder %s420_s15, 2  ;;  %s260_s4 = sand.u32 1, %s408_s12  }
 0x11d   : > { %s261_s5 = scalar_lea.sflag [#allocation3], %s260_s4 }
 0x11e   : > { %p322_p7 = pnand %p325_p4, %p484_p6 }
 0x120   : > { %p323_p8 = pneg %p322_p7 }
 0x122   : > { %403 = dma.done.wait (%p323_p8), %s261_s5, 128  }
 0x123   : > { %405 = vsyncadd (%p323_p8), %s261_s5, 4294967168  ;;  %p13_p9 = scmp.ge.s32.totalorder %s467_s18, 4   ;;  %s595_s12 = smov %s412_s13 }
 0x124   : > { %s596_s13 = smov %s416_s14  ;;  %s597_s14 = smov %s478_s21 }
 0x125   : > { %s598_s15 = smov %s467_s18  ;;  %15 = sbr.rel (!%p13_p9) target bundleno = 3 (0x3), region = 67 }
 0x12a   :  { %267 = vsyncpa [#allocation3], 1 }
 0x12b   :  { %269 = vsyncpa [#allocation3 + $0x1], 1 }

// kernel: tpu_custom_call.1
= control target key start
LH: loop header
LB: loop body
LE: loop exit
PB: predicated region body
PF: predicated region fallthrough
CT: control target
= control target key end

     0   :  { %8 = vsyncpa [#allocation3], 0  ;;  %s589_s0 = inlined_call_operand.vmem [shape: f32[16,32], index: 0, kind: input, shape index: {}]   ;;  %s590_s1 = inlined_call_operand.vmem [shape: f32[32,128], index: 1, kind: input, shape index: {}]   ;;  %s591_s2 = inlined_call_operand.vmem [shape: f32[128,32], index: 2, kind: input, shape index: {}]   ;;  %s592_s3 = inlined_call_operand.hbm [shape: f32[16,32], index: 3, kind: output, shape index: {}]  }
   0x1   :  { %10 = vsyncpa [#allocation3 + $0x1], 0  ;;  %s442_s12 = smov 0   ;;  %s444_s13 = smov 0  }
   0x2   :  { %s446_s14 = smov 0   ;;  %s448_s15 = smov 0  }
   0x3 LB: > { %s463_s16 = sadd.s32 4294967295, %s420_s15   ;;  %s308_s17 = sadd.s32 4294967294, %s420_s15   ;;  %s420_s15 = sphi %s448_s15, %s598_s15   ;;  %s416_s14 = sphi %s446_s14, %s597_s14   ;;  %s412_s13 = sphi %s444_s13, %s596_s13   ;;  %s408_s12 = sphi %s442_s12, %s595_s12  }
   0x4   : > { %s467_s18 = sadd.s32 1, %s420_s15   ;;  %s91_s19 = sadd.s32 1, %s416_s14 }
   0x5   : > { %s88_s20 = ssub.s32 %s420_s15, %s467_s18  ;;  %p101_p0 = scmp.ne.s32.totalorder %s416_s14, %s412_s13 }
   0x6   : > { %p89_p1 = scmp.eq.s32.totalorder %s88_s20, 0  ;;  %p102_p2 = scmp.eq.s32.totalorder %s463_s16, 1 }
   0x7   : > { %p107_p3 = scmp.ne.s32.totalorder %s412_s13, %s408_s12  ;;  %p108_p4 = scmp.eq.s32.totalorder %s308_s17, 1 }
   0x8   : > { %s478_s21 = scalar_select %p89_p1, %s416_s14, %s91_s19  }
   0x9   : > { %p480_p5 = por %p102_p2, %p101_p0  ;;  %p484_p6 = por %p108_p4, %p107_p3 }
   0xa   : > { %p311_p7 = scmp.ge.s32.totalorder %s420_s15, 1  ;;  %p139_p8 = scmp.lt.s32.totalorder %s420_s15, 3 }
   0xc   : > { %p140_p9 = pnand %p311_p7, %p139_p8 }
   0xd   : > { %p162_p10 = scmp.lt.s32.totalorder (!%p140_p9), %s463_s16, 1  ;;  %s159_s6 = sand.u32 (!%p140_p9), 1, %s412_s13  }
   0xe   : > { %143 = sbr.rel (%p140_p9) target bundleno = 284 (0x11c), region = 32  ;;  %s316_s8 = sshll.u32 (!%p140_p9), %s463_s16, 3 }
   0xf   : > { %s244_s11 = scalar_lea.hbm (!%p140_p9), %s592_s3, %s316_s8  ;;  %s378_s28 = scalar_lea.hbm (!%p140_p9), %s592_s3, 16 }
  0x10   : > { %s248_s20 = sshll.u32 (!%p140_p9), %s244_s11, 4  ;;  %s249_s20 = int_to_ptr.hbm [resolvable:$true] %s248_s20 }
  0x11   : > { %s372_s25 = sshra.s32 (!%p140_p9), %s249_s20, 4  ;;  %s373_s25 = int_to_ptr.hbm [resolvable:$true] %s372_s25 }
  0x12   : > { %s374_s26 = scalar_lea.hbm (!%p140_p9), %s373_s25, 8  ;;  %p379_p0 = scmp.lt.s32.totalorder (!%p140_p9), %s373_s25, %s592_s3 }
  0x13   : > { %v170_v0 = vld [vmem:[%s590_s1 + $0x18] sm:$0xff]  ;;  %v169_v1 = vld [vmem:[%s590_s1 + $0x10] sm:$0xff]  ;;  %v168_v4 = vld [vmem:[%s590_s1 + $0x8] sm:$0xff]  ;;  %s163_s7 = scalar_select %p162_p10, %s463_s16, 1  ;;  %vm171_vm0 = vcmask 261120  }
  0x14   : > { %187 = vmatpush.msra.mxu0 %v170_v0  ;;  %v211_v2 = vld [vmem:[%s591_s2 + $0x78] sm:$0xff]  ;;  %v210_v3 = vld [vmem:[%s591_s2 + $0x70] sm:$0xff]  ;;  %v209_v5 = vld [vmem:[%s591_s2 + $0x68] sm:$0xff]  ;;  %p375_p11 = scmp.ne.s32.totalorder %s373_s25, %s374_s26  ;;  %p380_p1 = scmp.lt.s32.totalorder %s378_s28, %s374_s26 }
  0x15   : > { %212 = vmatpush.msra.mxu1 %v211_v2  ;;  %v167_v6 = vld [vmem:[%s590_s1] sm:$0xff]  ;;  %s313_s17 = sshll.u32 %s163_s7, 3  ;;  %v207_v9 = vld [vmem:[%s591_s2 + $0x58] sm:$0xff]  ;;  %v206_v10 = vld [vmem:[%s591_s2 + $0x50] sm:$0xff]  ;;  %s312_s7 = sshll.u32 %s159_s6, 3 }
  0x16   : > { %188 = vmatpush.msra.mxu0 %v169_v1  ;;  %s165_s24 = scalar_lea.vmem %s589_s0, %s313_s17  ;;  %v208_v7 = vld [vmem:[%s591_s2 + $0x60] sm:$0xff]  ;;  %v205_v11 = vld [vmem:[%s591_s2 + $0x48] sm:$0xff]  ;;  %v203_v13 = vld [vmem:[%s591_s2 + $0x38] sm:$0xff]  ;;  %s161_s17 = scalar_lea.vmem [#allocation2], %s312_s7 }
  0x17   : > { %213 = vmatpush.msra.mxu1 %v210_v3  ;;  %v166_v8 = vld [vmem:[%s165_s24] sm:$0xff]  ;;  %v202_v14 = vld [vmem:[%s591_s2 + $0x30] sm:$0xff]  ;;  %v201_v15 = vld [vmem:[%s591_s2 + $0x28] sm:$0xff]  ;;  %s246_s19 = sshll.u32 %s161_s17, 4  ;;  %s234_s24 = scalar_lea.sflag [#allocation3], %s159_s6  ;;  %s247_s19 = int_to_ptr.vmem [resolvable:$true] %s246_s19 }
  0x18   : > { %189 = vmatpush.msra.mxu0 %v168_v4  ;;  %v204_v12 = vld [vmem:[%s591_s2 + $0x40] sm:$0xff]  ;;  %v199_v17 = vld [vmem:[%s591_s2 + $0x18] sm:$0xff]  ;;  %v198_v18 = vld [vmem:[%s591_s2 + $0x10] sm:$0xff]  ;;  %p376_p12 = pnand %p375_p11, %p480_p5  ;;  %p381_p2 = por %p380_p1, %p379_p0 }
  0x19   : > { %214 = vmatpush.msra.mxu1 %v209_v5  ;;  %v200_v16 = vld [vmem:[%s591_s2 + $0x20] sm:$0xff]  ;;  %v197_v19 = vld [vmem:[%s591_s2 + $0x8] sm:$0xff] }
  0x1a   : > { %190 = vmatpush.msra.mxu0 %v167_v6  ;;  %v196_v20 = vld [vmem:[%s591_s2] sm:$0xff]  ;;  %p377_p13 = pneg %p376_p12 }
  0x1b   : > { %314 = vmatmul.msk.f32.vlgmr.msra.gmra.mxu0 %vm171_vm0, %v166_v8  ;;  %215 = vmatpush.msra.mxu1 %v208_v7 }
  0x1c   : > { %p382_p3 = pnand %p381_p2, %p377_p13 }
  0x1d   : > { %216 = vmatpush.msra.mxu1 %v207_v9 }
  0x1f   : > { %217 = vmatpush.msra.mxu1 %v206_v10 }
  0x21   : > { %218 = vmatpush.msra.mxu1 %v205_v11 }
  0x23   : > { %219 = vmatpush.msra.mxu1 %v204_v12 }
  0x25   : > { %220 = vmatpush.msra.mxu1 %v203_v13 }
  0x27   : > { %221 = vmatpush.msra.mxu1 %v202_v14 }
  0x29   : > { %222 = vmatpush.msra.mxu1 %v201_v15 }
  0x2b   : > { %223 = vmatpush.msra.mxu1 %v200_v16 }
  0x2d   : > { %224 = vmatpush.msra.mxu1 %v199_v17 }
  0x2f   : > { %225 = vmatpush.msra.mxu1 %v198_v18 }
  0x31   : > { %226 = vmatpush.msra.mxu1 %v197_v19 }
  0x33   : > { %227 = vmatpush.msra.mxu1 %v196_v20 }
  0x98   : > { %v192_v21 = vpop.f32.mrf.mxu0 }
  0x99   : > { %v195_v22 = vmax.f32 %v192_v21, 0.0 }
  0x9b   : > { %228 = vmatmul.f32.vlgmr.msra.gmra.mxu1 %v195_v22 }
 0x118   : > { %v229_v23 = vpop.f32.mrf.mxu1 }
 0x119   : > { %232 = vst.msk [vmem:[%s161_s17] sm:$0xff] %vm171_vm0, %v229_v23 }
 0x11a   : > { %385 = shalt.err (!%p382_p3)
}
 0x11b   : > { %319 = dma.vmem_to_hbm [thread:$0]  (%p480_p5), %s247_s19, 128, %s249_s20, %s234_s24  }
 0x11c PF: > { %p325_p4 = scmp.ge.s32.totalorder %s420_s15, 2  ;;  %s260_s4 = sand.u32 1, %s408_s12  }
 0x11d   : > { %s261_s5 = scalar_lea.sflag [#allocation3], %s260_s4 }
 0x11e   : > { %p322_p7 = pnand %p325_p4, %p484_p6 }
 0x120   : > { %p323_p8 = pneg %p322_p7 }
 0x122   : > { %403 = dma.done.wait (%p323_p8), %s261_s5, 128  }
 0x123   : > { %405 = vsyncadd (%p323_p8), %s261_s5, 4294967168  ;;  %p13_p9 = scmp.ge.s32.totalorder %s467_s18, 4   ;;  %s595_s12 = smov %s412_s13 }
 0x124   : > { %s596_s13 = smov %s416_s14  ;;  %s597_s14 = smov %s478_s21 }
 0x125   : > { %s598_s15 = smov %s467_s18  ;;  %15 = sbr.rel (!%p13_p9) target bundleno = 3 (0x3), region = 67 }
 0x12a   :  { %267 = vsyncpa [#allocation3], 1 }
 0x12b   :  { %269 = vsyncpa [#allocation3 + $0x1], 1 }

</bundles_post_ra>
